<compile_context>
chip_gen: v5e
topology: v5e:2x2
jax: 0.10.0
libtpu: 0.0.40
codegen_flags: <defaults>
</compile_context>

<pallas_src>
import math

import jax
import jax.numpy as jnp
from jax.experimental import pallas as pl
from jax.experimental.pallas import tpu as pltpu


def _build_pe_table(d_model: int, max_len: int, dtype=jnp.float32) -> jnp.ndarray:
    """Deterministic sinusoidal PE buffer, shape (1, max_len, d_model), in `dtype`."""
    position = jnp.arange(max_len, dtype=jnp.float32)[:, None]                   # (max_len, 1)
    div_term = jnp.exp(
        jnp.arange(0, d_model, 2, dtype=jnp.float32) * (-math.log(10000.0) / d_model)
    )                                                                             # (ceil(d/2),)
    angles = position * div_term                                                  # (max_len, ceil(d/2))
    pe = jnp.zeros((max_len, d_model), dtype=jnp.float32)
    pe = pe.at[:, 0::2].set(jnp.sin(angles))
    pe = pe.at[:, 1::2].set(jnp.cos(angles[:, : d_model // 2]))                   # odd-d_model safe
    return pe[None, :, :].astype(dtype)                                           # (1, max_len, d_model)


def _pe_add_kernel(x_ref, pe_ref, o_ref):
    # x_ref / o_ref : (Bblk, TILE) flattened tile
    # pe_ref        : (1, TILE) shared tile, broadcast along sublanes.
    # In-kernel cast is a no-op when the PE buffer is already in x.dtype and
    # otherwise free (HBM-bound kernel, VALU slack).
    o_ref[...] = x_ref[...] + pe_ref[...].astype(x_ref.dtype)


def _choose_tiles(B: int, N: int, itemsize: int, x_tile_budget: int = 4 << 20):
    """Pick (batch_block, lane_tile) for the flattened [B, N] streaming add.

    lane_tile is a multiple of 128 (lane-dense, legal for the windowed PE
    BlockSpec); batch is kept whole unless even a 128-lane full-batch tile
    would blow the per-tile budget, in which case it is tiled at the dtype's
    sublane-packing granularity.
    """
    sub = {4: 8, 2: 16, 1: 32}.get(itemsize, 8)     # f32 / bf16 / int8-fp8
    bblk = B
    if B > sub and B * 128 * itemsize > x_tile_budget:
        bblk = sub
    lanes = (x_tile_budget // (bblk * itemsize)) // 128 * 128
    max_lanes = (N // 128) * 128                    # never exceed the array extent
    lanes = int(max(128, min(lanes, max_lanes)))
    return bblk, lanes


def positional_encoding_forward(x: jnp.ndarray, pe: jnp.ndarray, *,
                                donate_x: bool = False) -> jnp.ndarray:
    """x: [B, S, D]; pe: [1, max_len, D] buffer.  Returns x + pe[:, :S, :] in x.dtype."""
    B, S, D = x.shape
    _, max_len, Dp = pe.shape
    assert D == Dp, f"d_model mismatch: {D} vs {Dp}"
    assert S <= max_len, f"seq_len {S} exceeds max_len {max_len}"

    N = S * D
    x_flat = x.reshape(B, N)                        # contiguous -> free reshape
    pe_flat = pe.reshape(1, max_len * D)            # contiguous -> free reshape

    if N < 128:
        # Tiny model: a single full-dims block; slicing PE here is negligible.
        pe_flat = pe_flat[:, :N]
        bblk, tile = B, N
    else:
        bblk, tile = _choose_tiles(B, N, jnp.dtype(x.dtype).itemsize)

    # Batch is the innermost (fastest-varying) grid axis and the PE index_map
    # ignores it, so the shared PE tile is DMA'd once per lane-chunk.
    grid = (pl.cdiv(N, tile), pl.cdiv(B, bblk))

    out_flat = pl.pallas_call(
        _pe_add_kernel,
        out_shape=jax.ShapeDtypeStruct((B, N), x.dtype),
        grid_spec=pltpu.PrefetchScalarGridSpec(
            num_scalar_prefetch=0,
            grid=grid,
            in_specs=[
                pl.BlockSpec((bblk, tile), lambda c, b: (b, c)),   # x tile
                pl.BlockSpec((1, tile), lambda c, b: (0, c)),      # shared PE tile (windows full buffer)
            ],
            out_specs=pl.BlockSpec((bblk, tile), lambda c, b: (b, c)),
        ),
        compiler_params=pltpu.CompilerParams(
            # Every output block is written exactly once -> both axes are safe
            # to shard across TensorCores.
            dimension_semantics=("parallel", "parallel"),
            vmem_limit_bytes=48 << 20,
        ),
        # Only alias when the caller actually donates x (e.g. jit donate_argnums);
        # otherwise XLA inserts a defensive copy, adding HBM traffic.
        input_output_aliases=({0: 0} if donate_x else {}),
    )(x_flat, pe_flat)

    return out_flat.reshape(B, S, D)


if __name__ == "__main__":
    # Small shapes consistent with the module: batch=2, seq=8, d_model=32.
    B, S, D = 2, 8, 32
    MAX_LEN = 64  # small stand-in for max_len=5000

    key = jax.random.PRNGKey(0)
    x = jax.random.normal(key, (B, S, D), dtype=jnp.float32)

    # PE buffer built once at "init", directly in the model dtype.
    pe = _build_pe_table(D, MAX_LEN, dtype=x.dtype)

    # Reference in plain JAX (computed before the kernel call).
    ref = x + pe[:, :S, :]

    out = jax.block_until_ready(positional_encoding_forward(x, pe))

    assert out.shape == (B, S, D)
    assert jnp.allclose(out, ref, atol=1e-6, rtol=1e-6)

    print("KERNEL_OK")
</pallas_src>

<mosaic_0001>
module attributes {stable_mosaic.version = 11 : i64} {
  func.func @_pe_add_kernel(%arg0: i32, %arg1: i32, %arg2: memref<2x256xf32, #tpu.memory_space<vmem>>, %arg3: memref<1x256xf32, #tpu.memory_space<vmem>>, %arg4: memref<2x256xf32, #tpu.memory_space<vmem>>) attributes {dimension_semantics = [#tpu.dimension_semantics<parallel>, #tpu.dimension_semantics<parallel>], iteration_bounds = array<i64: 1, 1>, scalar_prefetch = 0 : i64, scratch_operands = 0 : i64, tpu.core_type = #tpu.core_type<tc>, window_params = [{transform_indices = @transform_0, window_bounds = array<i64: 2, 256>}, {transform_indices = @transform_1, window_bounds = array<i64: 1, 256>}, {transform_indices = @transform_2, window_bounds = array<i64: 2, 256>}]} {
    %c0 = arith.constant 0 : index
    %c0_0 = arith.constant 0 : index
    %0 = vector.load %arg2[%c0, %c0_0] : memref<2x256xf32, #tpu.memory_space<vmem>>, vector<2x256xf32>
    %c0_1 = arith.constant 0 : index
    %c0_2 = arith.constant 0 : index
    %1 = vector.load %arg3[%c0_1, %c0_2] : memref<1x256xf32, #tpu.memory_space<vmem>>, vector<1x256xf32>
    %2 = vector.broadcast %1 : vector<1x256xf32> to vector<2x256xf32>
    %3 = arith.addf %0, %2 : vector<2x256xf32>
    %c0_3 = arith.constant 0 : index
    %c0_4 = arith.constant 0 : index
    %4 = vector.load %arg4[%c0_3, %c0_4] : memref<2x256xf32, #tpu.memory_space<vmem>>, vector<2x256xf32>
    tpu.vector_store %arg4[%c0_3, %c0_4], %3 {strides = array<i32>} : memref<2x256xf32, #tpu.memory_space<vmem>>, vector<2x256xf32>,
    return
  }
  func.func @transform_0(%arg0: i32, %arg1: i32) -> (i32, i32) {
    %c0_i32 = arith.constant 0 : i32
    return %arg1, %arg0 : i32, i32
  }
  func.func @transform_1(%arg0: i32, %arg1: i32) -> (i32, i32) {
    %c0_i32 = arith.constant 0 : i32
    %c0_i32_0 = arith.constant 0 : i32
    return %c0_i32, %arg0 : i32, i32
  }
  func.func @transform_2(%arg0: i32, %arg1: i32) -> (i32, i32) {
    %c0_i32 = arith.constant 0 : i32
    return %arg1, %arg0 : i32, i32
  }
}

</mosaic_0001>

<bundles_post_ra>
// kernel: tpu_custom_call.1
= control target key start
LH: loop header
LB: loop body
LE: loop exit
PB: predicated region body
PF: predicated region fallthrough
CT: control target
= control target key end

     0   :  { %7 = vsyncpa [#allocation3], 0  ;;  %s177_s0 = inlined_call_operand.hbm [shape: f32[2,256], index: 0, kind: input, shape index: {}]   ;;  %s178_s1 = inlined_call_operand.hbm [shape: f32[1,2048], index: 1, kind: input, shape index: {}]   ;;  %s179_s2 = inlined_call_operand.hbm [shape: f32[2,256], index: 2, kind: output, shape index: {}]  }
   0x1   :  { %8 = vsyncpa [#allocation6], 0 }
   0x2   :  { %9 = vsyncpa [#allocation4], 0  ;;  %s15_s11 = sshll.u32 %s177_s0, 4  ;;  %s150_s12 = smov [#allocation2]   ;;  %s16_s11 = int_to_ptr.hbm [resolvable:$true] %s15_s11 }
   0x3   :  { %s17_s13 = sshll.u32 %s150_s12, 4  ;;  %s26_s16 = sshll.u32 %s178_s1, 4  ;;  %s18_s13 = int_to_ptr.vmem [resolvable:$true] %s17_s13  ;;  %s27_s16 = int_to_ptr.hbm [resolvable:$true] %s26_s16 }
   0x4   :  { %20 = dma.hbm_to_vmem [thread:$0]  %s16_s11, 64, %s18_s13, [#allocation3]  }
   0x5   :  { %s151_s17 = smov [#allocation5]  }
   0x6   :  { %s28_s18 = sshll.u32 %s151_s17, 4  ;;  %s29_s18 = int_to_ptr.vmem [resolvable:$true] %s28_s18 }
   0x7   :  { %31 = dma.hbm_to_vmem [thread:$0]  %s27_s16, 32, %s29_s18, [#allocation6]  }
   0x8   :  { %144 = dma.done.wait [#allocation3], 64  }
   0x9   :  { %145 = vsyncadd [#allocation3], 4294967232 }
   0xa   :  { %146 = dma.done.wait [#allocation6], 32  }
   0xb   :  { %147 = vsyncadd [#allocation6], 4294967264  ;;  %v41_v0 = vld [vmem:[#allocation5] sm:$0x3]  ;;  %vm46_vm0 = vcmask 1041408   ;;  %s152_s0 = smov [#allocation7]  }
   0xc   :  { %v43_v1 = vperm.slane %v41_v0, 0  ;;  %v44_v2 = vperm.slane %v41_v0, 1  ;;  %v40_v3 = vld [vmem:[#allocation2] sm:$0xf]  ;;  %s56_s19 = sshll.u32 %s152_s0, 4  ;;  %s58_s21 = sshll.u32 %s179_s2, 4  ;;  %s57_s19 = int_to_ptr.vmem [resolvable:$true] %s56_s19  ;;  %s59_s21 = int_to_ptr.hbm [resolvable:$true] %s58_s21 }
   0xe   :  { %v45_v4 = vrot.slane %v44_v2, 6 }
  0x10   :  { %v47_v5 = vsel %vm46_vm0, %v43_v1, %v45_v4 }
  0x11   :  { %v49_v6 = vadd.f32 %v47_v5, %v40_v3 }
  0x13   :  { %50 = vst [vmem:[#allocation7] sm:$0xf] %v49_v6 }
  0x14   :  { %61 = dma.vmem_to_hbm [thread:$0]  %s57_s19, 64, %s59_s21, [#allocation4]  }
  0x15   :  { %148 = dma.done.wait [#allocation4], 64  }
  0x16   :  { %149 = vsyncadd [#allocation4], 4294967232 }
  0x17   :  { %66 = vsyncpa [#allocation3], 1 }
  0x18   :  { %67 = vsyncpa [#allocation6], 1 }
  0x19   :  { %68 = vsyncpa [#allocation4], 1 }

</bundles_post_ra>
